<compile_context>
chip_gen: v7x
topology: tpu7x:2x2x1
jax: 0.10.0
libtpu: 0.0.40
codegen_flags: <defaults>
</compile_context>

<pallas_src>
import jax
import jax.numpy as jnp
from jax.experimental import pallas as pl
from jax.experimental.pallas import tpu as pltpu

F = 128          # lane-aligned feature width (covers 5/10/20/7 real features)
ONE_LANE = 127   # spare lane carrying a constant 1.0 used for bias folding
TB_MAX = 512     # max batch-tile rows per grid step


# ---------------------------------------------------------------------------
# Pallas kernel: relu(x@W1) -> relu(@W2) -> @W3   (biases are folded into W*)
# x_ref: (TB, 128), w_ref: (3, 128, 128), o_ref: (TB, 128); all VMEM tiles.
# ---------------------------------------------------------------------------
def cnn_kernel(x_ref, w_ref, o_ref):
    h = jnp.maximum(
        jnp.dot(x_ref[...], w_ref[0], preferred_element_type=jnp.float32), 0.0)
    # MaxPool1d(kernel_size=1) is the identity -> nothing to do.
    h = jnp.maximum(
        jnp.dot(h, w_ref[1], preferred_element_type=jnp.float32), 0.0)
    o_ref[...] = jnp.dot(h, w_ref[2], preferred_element_type=jnp.float32)


# ---------------------------------------------------------------------------
# One-time parameter packing (done at init, NOT per forward call).
# Bias folding: x carries a 1.0 in lane ONE_LANE; each weight matrix gets its
# bias as row ONE_LANE, and (for non-final layers) a 1.0 at [ONE_LANE, ONE_LANE]
# so the constant lane survives the matmul + ReLU into the next layer.
# ---------------------------------------------------------------------------
def pack_params(params):
    w1, b1, w2, b2, w3, b3 = params
    w = jnp.zeros((3, F, F), jnp.float32)
    # layer 1: (5 -> 10)
    w = w.at[0, :5, :10].set(w1.T.astype(jnp.float32))
    w = w.at[0, ONE_LANE, :10].set(b1.astype(jnp.float32))
    w = w.at[0, ONE_LANE, ONE_LANE].set(1.0)
    # layer 2: (10 -> 20)
    w = w.at[1, :10, :20].set(w2.T.astype(jnp.float32))
    w = w.at[1, ONE_LANE, :20].set(b2.astype(jnp.float32))
    w = w.at[1, ONE_LANE, ONE_LANE].set(1.0)
    # output linear: (20 -> 7)
    w = w.at[2, :20, :7].set(w3.T.astype(jnp.float32))
    w = w.at[2, ONE_LANE, :7].set(b3.astype(jnp.float32))
    return w


# ---------------------------------------------------------------------------
# Forward: pad x into a (BP, 128) tile with the constant-1 lane, run kernel.
# ---------------------------------------------------------------------------
def cnn_forward(x_ncl, w_packed):
    """x_ncl: (B, 5, 1) float32 (NCL, as in PyTorch). Returns (B, 7)."""
    B, C_in, L = x_ncl.shape
    feat = C_in * L  # == 5

    BP = -(-B // 8) * 8                 # round batch up to sublane multiple
    TB = min(BP, TB_MAX)                # batch tile per grid step
    BP = -(-BP // TB) * TB              # round up to tile multiple
    grid = (BP // TB,)

    x2d = x_ncl.reshape(B, feat).astype(jnp.float32)
    xp = jnp.zeros((BP, F), jnp.float32)
    xp = xp.at[:B, :feat].set(x2d)
    xp = xp.at[:B, ONE_LANE].set(1.0)   # constant-1 lane for bias folding

    out_pad = pl.pallas_call(
        cnn_kernel,
        out_shape=jax.ShapeDtypeStruct((BP, F), jnp.float32),
        grid=grid,
        in_specs=[
            pl.BlockSpec((TB, F), lambda i: (i, 0)),        # x: tiled over batch
            pl.BlockSpec((3, F, F), lambda i: (0, 0, 0)),   # weights: VMEM-resident
        ],
        out_specs=pl.BlockSpec((TB, F), lambda i: (i, 0)),
        compiler_params=pltpu.CompilerParams(
            dimension_semantics=("parallel",)),
    )(xp, w_packed)

    return out_pad[:B, :7]


cnn_forward_jit = jax.jit(cnn_forward)


# ---------------------------------------------------------------------------
# Deterministic parameter init (PyTorch-style uniform(-1/sqrt(fan_in), +...))
# ---------------------------------------------------------------------------
def init_params(key):
    def unif(k, shape, fan_in):
        bound = 1.0 / jnp.sqrt(fan_in)
        return jax.random.uniform(k, shape, jnp.float32, -bound, bound)

    ks = jax.random.split(key, 6)
    w1 = unif(ks[0], (10, 5), 5.0)    # Conv1d(5,10,1).weight squeezed to (out,in)
    b1 = unif(ks[1], (10,), 5.0)
    w2 = unif(ks[2], (20, 10), 10.0)  # Conv1d(10,20,1).weight squeezed
    b2 = unif(ks[3], (20,), 10.0)
    w3 = unif(ks[4], (7, 20), 20.0)   # Linear(20,7).weight
    b3 = unif(ks[5], (7,), 20.0)
    return (w1, b1, w2, b2, w3, b3)


if __name__ == "__main__":
    key = jax.random.PRNGKey(0)
    k_params, k_x = jax.random.split(key)

    params = init_params(k_params)
    w_packed = pack_params(params)                          # padded ONCE at init
    x = jax.random.normal(k_x, (2, 5, 1), jnp.float32)      # (batch=2, channels=5, length=1)

    out = cnn_forward_jit(x, w_packed)
    out = jax.block_until_ready(out)

    # sanity check against a pure-JAX reference of the same math
    w1, b1, w2, b2, w3, b3 = params
    x2d = x.reshape(2, 5)
    h1 = jnp.maximum(x2d @ w1.T + b1, 0.0)
    h2 = jnp.maximum(h1 @ w2.T + b2, 0.0)
    ref = h2 @ w3.T + b3
    assert out.shape == (2, 7)
    assert jnp.allclose(out, ref, atol=1e-5), "mismatch vs reference"

    print("KERNEL_OK")
</pallas_src>

<mosaic_0001>
module attributes {stable_mosaic.version = 11 : i64} {
  func.func @cnn_kernel(%arg0: i32, %arg1: memref<8x128xf32, #tpu.memory_space<vmem>>, %arg2: memref<3x128x128xf32, #tpu.memory_space<vmem>>, %arg3: memref<8x128xf32, #tpu.memory_space<vmem>>) attributes {dimension_semantics = [#tpu.dimension_semantics<parallel>], iteration_bounds = array<i64: 1>, scalar_prefetch = 0 : i64, scratch_operands = 0 : i64, tpu.core_type = #tpu.core_type<tc>, window_params = [{transform_indices = @transform_0, window_bounds = array<i64: 8, 128>}, {pipeline_mode = #tpu.pipeline_mode<synchronous>, transform_indices = @transform_1, window_bounds = array<i64: 3, 128, 128>}, {transform_indices = @transform_2, window_bounds = array<i64: 8, 128>}]} {
    %c0 = arith.constant 0 : index
    %c0_0 = arith.constant 0 : index
    %0 = vector.load %arg1[%c0, %c0_0] : memref<8x128xf32, #tpu.memory_space<vmem>>, vector<8x128xf32>
    %c0_1 = arith.constant 0 : index
    %c0_2 = arith.constant 0 : index
    %c0_3 = arith.constant 0 : index
    %1 = vector.load %arg2[%c0_1, %c0_2, %c0_3] : memref<3x128x128xf32, #tpu.memory_space<vmem>>, vector<1x128x128xf32>
    %2 = vector.shape_cast %1 : vector<1x128x128xf32> to vector<128x128xf32>
    %cst = arith.constant dense<0.000000e+00> : vector<8x128xf32>
    %3 = tpu.matmul %0, %2, %cst {dimension_numbers = #tpu.dot_dimension_numbers<[1], [0], [0], [1], [0, 0, 1, 1], [], []>} : vector<8x128xf32>, vector<128x128xf32>, vector<8x128xf32> -> vector<8x128xf32>
    %cst_4 = arith.constant 0.000000e+00 : f32
    %4 = vector.broadcast %cst_4 : f32 to vector<8x128xf32>
    %5 = arith.maximumf %3, %4 : vector<8x128xf32>
    %c1 = arith.constant 1 : index
    %c0_5 = arith.constant 0 : index
    %c0_6 = arith.constant 0 : index
    %6 = vector.load %arg2[%c1, %c0_5, %c0_6] : memref<3x128x128xf32, #tpu.memory_space<vmem>>, vector<1x128x128xf32>
    %7 = vector.shape_cast %6 : vector<1x128x128xf32> to vector<128x128xf32>
    %cst_7 = arith.constant dense<0.000000e+00> : vector<8x128xf32>
    %8 = tpu.matmul %5, %7, %cst_7 {dimension_numbers = #tpu.dot_dimension_numbers<[1], [0], [0], [1], [0, 0, 1, 1], [], []>} : vector<8x128xf32>, vector<128x128xf32>, vector<8x128xf32> -> vector<8x128xf32>
    %cst_8 = arith.constant 0.000000e+00 : f32
    %9 = vector.broadcast %cst_8 : f32 to vector<8x128xf32>
    %10 = arith.maximumf %8, %9 : vector<8x128xf32>
    %c2 = arith.constant 2 : index
    %c0_9 = arith.constant 0 : index
    %c0_10 = arith.constant 0 : index
    %11 = vector.load %arg2[%c2, %c0_9, %c0_10] : memref<3x128x128xf32, #tpu.memory_space<vmem>>, vector<1x128x128xf32>
    %12 = vector.shape_cast %11 : vector<1x128x128xf32> to vector<128x128xf32>
    %cst_11 = arith.constant dense<0.000000e+00> : vector<8x128xf32>
    %13 = tpu.matmul %10, %12, %cst_11 {dimension_numbers = #tpu.dot_dimension_numbers<[1], [0], [0], [1], [0, 0, 1, 1], [], []>} : vector<8x128xf32>, vector<128x128xf32>, vector<8x128xf32> -> vector<8x128xf32>
    %c0_12 = arith.constant 0 : index
    %c0_13 = arith.constant 0 : index
    %14 = vector.load %arg3[%c0_12, %c0_13] : memref<8x128xf32, #tpu.memory_space<vmem>>, vector<8x128xf32>
    tpu.vector_store %arg3[%c0_12, %c0_13], %13 {strides = array<i32>} : memref<8x128xf32, #tpu.memory_space<vmem>>, vector<8x128xf32>,
    return
  }
  func.func @transform_0(%arg0: i32) -> (i32, i32) {
    %c0_i32 = arith.constant 0 : i32
    %c0_i32_0 = arith.constant 0 : i32
    return %arg0, %c0_i32 : i32, i32
  }
  func.func @transform_1(%arg0: i32) -> (i32, i32, i32) {
    %c0_i32 = arith.constant 0 : i32
    %c0_i32_0 = arith.constant 0 : i32
    %c0_i32_1 = arith.constant 0 : i32
    %c0_i32_2 = arith.constant 0 : i32
    return %c0_i32, %c0_i32_0, %c0_i32_1 : i32, i32, i32
  }
  func.func @transform_2(%arg0: i32) -> (i32, i32) {
    %c0_i32 = arith.constant 0 : i32
    %c0_i32_0 = arith.constant 0 : i32
    return %arg0, %c0_i32 : i32, i32
  }
}

</mosaic_0001>

<bundles_post_ra>
// kernel: cnn_forward.1
= control target key start
LH: loop header
LB: loop body
LE: loop exit
PB: predicated region body
PF: predicated region fallthrough
CT: control target
= control target key end

     0   :  { %7 = vsyncpa [#allocation3], 0  ;;  %s552_s9 = smov [#allocation2]   ;;  %s621_s0 = inlined_call_operand.vmem [shape: f32[8,128], index: 0, kind: input, shape index: {}]   ;;  %s622_s1 = inlined_call_operand.hbm [shape: f32[3,128,128], index: 1, kind: input, shape index: {}]   ;;  %s623_s2 = inlined_call_operand.vmem [shape: f32[8,128], index: 2, kind: output, shape index: {}]  }
   0x1   :  { %s15_s10 = sshll.u32 %s552_s9, 4  ;;  %s528_s13 = scalar_lea.hbm %s622_s1, 6144  ;;  %s16_s10 = int_to_ptr.vmem [resolvable:$true] %s15_s10 }
   0x2   :  { %p529_p0 = scmp.ne.s32.totalorder %s622_s1, %s528_s13  ;;  %p532_p1 = scmp.lt.u32.totalorder %s528_s13, %s622_s1 }
   0x4   :  { %p534_p2 = pnand %p532_p1, %p529_p0 }
   0x6   :  { %537 = shalt.err (!%p534_p2)
}
   0x7   :  { %s538_s18 = scalar_lea.vmem %s16_s10, 6144  ;;  %p543_p4 = scmp.lt.s32.totalorder %s16_s10, %s16_s10 }
   0x8   :  { %p539_p3 = scmp.ne.s32.totalorder %s16_s10, %s538_s18  ;;  %p544_p5 = scmp.lt.s32.totalorder %s538_s18, %s538_s18 }
   0xa   :  { %p545_p6 = por %p544_p5, %p543_p4 }
   0xc   :  { %p546_p7 = pnand %p545_p6, %p539_p3 }
   0xe   :  { %549 = shalt.err (!%p546_p7)
}
   0xf   :  { %s553_s19 = smov 128   ;;  %s554_s20 = smov 8  }
  0x10   :  { %21 = dma.hbm_to_vmem [thread:$0]  %s622_s1, 6144, %s16_s10, [#allocation3], %s553_s19, %s553_s19, %s554_s20  }
  0x11   :  { %550 = dma.done.wait [#allocation3], 6144  }
  0x12   :  { %551 = vsyncadd [#allocation3], 4294961152  ;;  %v555_v0 = vmov 0.0|0.0   ;;  %vm556_vm0 = vmmov 0   ;;  %v557_v1 = vmov 0.0   ;;  %v26_v2 = vld [vmem:[#allocation2] sm:$0xff] }
  0x13   :  { %450 = vmatprep.subr.bf16.mxu0 %v555_v0  ;;  %377 = vmatprep.mubr.msk.f32.mxu0 %vm556_vm0, %v557_v1  ;;  %v27_v3 = vld [vmem:[#allocation2 + $0x8] sm:$0xff]  ;;  %v28_v4 = vld [vmem:[#allocation2 + $0x10] sm:$0xff]  ;;  %v29_v6 = vld [vmem:[#allocation2 + $0x18] sm:$0xff] }
  0x14   :  { %474 = vmatprep.subr.bf16.mxu1 %v555_v0  ;;  %412 = vmatprep.mubr.msk.f32.mxu1 %vm556_vm0, %v557_v1  ;;  %v451_v5 = vpack.c.bf16 %v27_v3, %v26_v2  ;;  %v454_v7 = vpack.c.bf16 %v29_v6, %v28_v4  ;;  %v30_v8 = vld [vmem:[#allocation2 + $0x20] sm:$0xff]  ;;  %v31_v9 = vld [vmem:[#allocation2 + $0x28] sm:$0xff]  ;;  %v116_v12 = vld [vmem:[#allocation2 + $0x90] sm:$0xff] }
  0x15   :  { %v114_v10 = vld [vmem:[#allocation2 + $0x80] sm:$0xff]  ;;  %v115_v11 = vld [vmem:[#allocation2 + $0x88] sm:$0xff]  ;;  %v117_v13 = vld [vmem:[#allocation2 + $0x98] sm:$0xff]  ;;  %v457_v14 = vpack.c.bf16 %v31_v9, %v30_v8 }
  0x16   :  { %452 = vmatpush3.bf16.msra.mxu0 %v451_v5  ;;  %v475_v15 = vpack.c.bf16 %v115_v11, %v114_v10  ;;  %v32_v16 = vld [vmem:[#allocation2 + $0x30] sm:$0xff]  ;;  %v33_v17 = vld [vmem:[#allocation2 + $0x38] sm:$0xff]  ;;  %v478_v18 = vpack.c.bf16 %v117_v13, %v116_v12  ;;  %v118_v19 = vld [vmem:[#allocation2 + $0xa0] sm:$0xff] }
  0x17   :  { %453 = vmatprep.subr.bf16.mxu0 %v555_v0  ;;  %v119_v20 = vld [vmem:[#allocation2 + $0xa8] sm:$0xff]  ;;  %v460_v21 = vpack.c.bf16 %v33_v17, %v32_v16  ;;  %v34_v22 = vld [vmem:[#allocation2 + $0x40] sm:$0xff]  ;;  %v120_v25 = vld [vmem:[#allocation2 + $0xb0] sm:$0xff] }
  0x18   :  { %476 = vmatpush3.bf16.msra.mxu1 %v475_v15  ;;  %v35_v23 = vld [vmem:[#allocation2 + $0x48] sm:$0xff]  ;;  %v481_v24 = vpack.c.bf16 %v119_v20, %v118_v19  ;;  %v121_v26 = vld [vmem:[#allocation2 + $0xb8] sm:$0xff]  ;;  %v36_v28 = vld [vmem:[#allocation2 + $0x50] sm:$0xff] }
  0x19   :  { %477 = vmatprep.subr.bf16.mxu1 %v555_v0  ;;  %v463_v27 = vpack.c.bf16 %v35_v23, %v34_v22  ;;  %v37_v29 = vld [vmem:[#allocation2 + $0x58] sm:$0xff]  ;;  %v484_v30 = vpack.c.bf16 %v121_v26, %v120_v25  ;;  %v122_v31 = vld [vmem:[#allocation2 + $0xc0] sm:$0xff]  ;;  %v123_v32 = vld [vmem:[#allocation2 + $0xc8] sm:$0xff] }
  0x1a   :  { %455 = vmatpush3.bf16.msra.mxu0 %v454_v7  ;;  %v466_v33 = vpack.c.bf16 %v37_v29, %v36_v28  ;;  %v38_v34 = vld [vmem:[#allocation2 + $0x60] sm:$0xff]  ;;  %v39_v35 = vld [vmem:[#allocation2 + $0x68] sm:$0xff]  ;;  %v487_v36 = vpack.c.bf16 %v123_v32, %v122_v31  ;;  %v124_v37 = vld [vmem:[#allocation2 + $0xd0] sm:$0xff] }
  0x1b   :  { %456 = vmatprep.subr.bf16.mxu0 %v555_v0  ;;  %v125_v38 = vld [vmem:[#allocation2 + $0xd8] sm:$0xff]  ;;  %v469_v39 = vpack.c.bf16 %v39_v35, %v38_v34  ;;  %v40_v40 = vld [vmem:[#allocation2 + $0x70] sm:$0xff]  ;;  %v126_v43 = vld [vmem:[#allocation2 + $0xe0] sm:$0xff] }
  0x1c   :  { %479 = vmatpush3.bf16.msra.mxu1 %v478_v18  ;;  %v41_v41 = vld [vmem:[#allocation2 + $0x78] sm:$0xff]  ;;  %v490_v42 = vpack.c.bf16 %v125_v38, %v124_v37  ;;  %v127_v44 = vld [vmem:[#allocation2 + $0xe8] sm:$0xff]  ;;  %v25_v47 = vld [vmem:[%s621_s0] sm:$0xff] }
  0x1d   :  { %480 = vmatprep.subr.bf16.mxu1 %v555_v0  ;;  %v472_v45 = vpack.c.bf16 %v41_v41, %v40_v40  ;;  %v493_v46 = vpack.c.bf16 %v127_v44, %v126_v43  ;;  %v128_v48 = vld [vmem:[#allocation2 + $0xf0] sm:$0xff]  ;;  %v129_v49 = vld [vmem:[#allocation2 + $0xf8] sm:$0xff]  ;;  %v202_v51 = vld [vmem:[#allocation2 + $0x100] sm:$0xff] }
  0x1e   :  { %458 = vmatpush3.bf16.msra.mxu0 %v457_v14  ;;  %v496_v50 = vpack.c.bf16 %v129_v49, %v128_v48  ;;  %v203_v52 = vld [vmem:[#allocation2 + $0x108] sm:$0xff]  ;;  %v204_v53 = vld [vmem:[#allocation2 + $0x110] sm:$0xff]  ;;  %v205_v55 = vld [vmem:[#allocation2 + $0x118] sm:$0xff] }
  0x1f   :  { %459 = vmatprep.subr.bf16.mxu0 %v555_v0  ;;  %v499_v54 = vpack.c.bf16 %v203_v52, %v202_v51  ;;  %v502_v56 = vpack.c.bf16 %v205_v55, %v204_v53  ;;  %v206_v57 = vld [vmem:[#allocation2 + $0x120] sm:$0xff]  ;;  %v207_v58 = vld [vmem:[#allocation2 + $0x128] sm:$0xff]  ;;  %v208_v60 = vld [vmem:[#allocation2 + $0x130] sm:$0xff] }
  0x20   :  { %482 = vmatpush3.bf16.msra.mxu1 %v481_v24  ;;  %v505_v59 = vpack.c.bf16 %v207_v58, %v206_v57  ;;  %v209_v61 = vld [vmem:[#allocation2 + $0x138] sm:$0xff]  ;;  %v210_v63 = vld [vmem:[#allocation2 + $0x140] sm:$0xff]  ;;  %v212_v3 = vld [vmem:[#allocation2 + $0x150] sm:$0xff] }
  0x21   :  { %483 = vmatprep.subr.bf16.mxu1 %v555_v0  ;;  %v508_v62 = vpack.c.bf16 %v209_v61, %v208_v60  ;;  %v213_v4 = vld [vmem:[#allocation2 + $0x158] sm:$0xff]  ;;  %v214_v6 = vld [vmem:[#allocation2 + $0x160] sm:$0xff]  ;;  %v215_v7 = vld [vmem:[#allocation2 + $0x168] sm:$0xff] }
  0x22   :  { %461 = vmatpush3.bf16.msra.mxu0 %v460_v21  ;;  %v514_v5 = vpack.c.bf16 %v213_v4, %v212_v3  ;;  %v517_v8 = vpack.c.bf16 %v215_v7, %v214_v6  ;;  %v216_v12 = vld [vmem:[#allocation2 + $0x170] sm:$0xff]  ;;  %v217_v13 = vld [vmem:[#allocation2 + $0x178] sm:$0xff] }
  0x23   :  { %462 = vmatprep.subr.bf16.mxu0 %v555_v0  ;;  %v520_v14 = vpack.c.bf16 %v217_v13, %v216_v12 }
  0x24   :  { %485 = vmatpush3.bf16.msra.mxu1 %v484_v30 }
  0x25   :  { %486 = vmatprep.subr.bf16.mxu1 %v555_v0 }
  0x26   :  { %464 = vmatpush3.bf16.msra.mxu0 %v463_v27 }
  0x27   :  { %465 = vmatprep.subr.bf16.mxu0 %v555_v0 }
  0x28   :  { %488 = vmatpush3.bf16.msra.mxu1 %v487_v36 }
  0x29   :  { %489 = vmatprep.subr.bf16.mxu1 %v555_v0 }
  0x2a   :  { %467 = vmatpush3.bf16.msra.mxu0 %v466_v33 }
  0x2b   :  { %468 = vmatprep.subr.bf16.mxu0 %v555_v0 }
  0x2c   :  { %491 = vmatpush3.bf16.msra.mxu1 %v490_v42 }
  0x2d   :  { %492 = vmatprep.subr.bf16.mxu1 %v555_v0 }
  0x2e   :  { %470 = vmatpush3.bf16.msra.mxu0 %v469_v39 }
  0x2f   :  { %471 = vmatprep.subr.bf16.mxu0 %v555_v0 }
  0x30   :  { %494 = vmatpush3.bf16.msra.mxu1 %v493_v46 }
  0x31   :  { %495 = vmatprep.subr.bf16.mxu1 %v555_v0 }
  0x32   :  { %473 = vmatpush3.bf16.msra.mxu0 %v472_v45 }
  0x33   :  { %498 = vmatprep.subr.bf16.mxu0 %v555_v0 }
  0x34   :  { %497 = vmatpush3.bf16.msra.mxu1 %v496_v50 }
  0x35   :  { %378 = vmatmul.mubr.f32.vlgmr.msra.gmra.mrb[0].mxu0 %v25_v47 }
  0x36   :  { %447 = vmatprep.mubr.msk.f32.mxu0 %vm556_vm0, %v557_v1  ;;  %500 = vmatpush3.bf16.msra.mxu0 %v499_v54  ;;  %v211_v1 = vld [vmem:[#allocation2 + $0x148] sm:$0xff] }
  0x37   :  { %501 = vmatprep.subr.bf16.mxu0 %v555_v0  ;;  %v511_v2 = vpack.c.bf16 %v211_v1, %v210_v63 }
  0x3a   :  { %503 = vmatpush3.bf16.msra.mxu0 %v502_v56 }
  0x3b   :  { %504 = vmatprep.subr.bf16.mxu0 %v555_v0 }
  0x3e   :  { %506 = vmatpush3.bf16.msra.mxu0 %v505_v59 }
  0x3f   :  { %507 = vmatprep.subr.bf16.mxu0 %v555_v0 }
  0x42   :  { %509 = vmatpush3.bf16.msra.mxu0 %v508_v62 }
  0x43   :  { %510 = vmatprep.subr.bf16.mxu0 %v555_v0 }
  0x46   :  { %512 = vmatpush3.bf16.msra.mxu0 %v511_v2 }
  0x47   :  { %513 = vmatprep.subr.bf16.mxu0 %v555_v0 }
  0x4a   :  { %515 = vmatpush3.bf16.msra.mxu0 %v514_v5 }
  0x4b   :  { %516 = vmatprep.subr.bf16.mxu0 %v555_v0 }
  0x4e   :  { %518 = vmatpush3.bf16.msra.mxu0 %v517_v8 }
  0x4f   :  { %519 = vmatprep.subr.bf16.mxu0 %v555_v0 }
  0x52   :  { %521 = vmatpush3.bf16.msra.mxu0 %v520_v14 }
 0x108   :  { %v108_v9 = vpop.f32.mrb[0].mxu0 }
 0x109   :  { %v112_v10 = vmax.f32 %v108_v9, 0.0  ;;  %v379_v11 = vpop.f32.mrb[1].mxu0 }
 0x10b   :  { %413 = vmatmul.mubr.f32.vlgmr.msra.gmra.mrb[0].mxu1 %v112_v10 }
 0x1de   :  { %v196_v15 = vpop.f32.mrb[0].mxu1 }
 0x1df   :  { %v200_v16 = vmax.f32 %v196_v15, 0.0  ;;  %v414_v17 = vpop.f32.mrb[1].mxu1 }
 0x1e1   :  { %448 = vmatmul.mubr.f32.vlgmr.msra.gmra.mrb[2].mxu0 %v200_v16 }
 0x2b4   :  { %v284_v18 = vpop.f32.mrb[2].mxu0 }
 0x2b5   :  { %288 = vst [vmem:[%s623_s2] sm:$0xff] %v284_v18  ;;  %v449_v19 = vpop.f32.mrb[3].mxu0 }
 0x2b6   :  { %293 = vsyncpa [#allocation3], 1 }

</bundles_post_ra>
